<compile_context>
chip_gen: v6e
topology: v6e:2x2x1
jax: 0.10.0
libtpu: 0.0.40
codegen_flags: <defaults>
</compile_context>

<pallas_src>
import numpy as np
import jax
import jax.numpy as jnp
from jax.experimental import pallas as pl
from jax.experimental.pallas import tpu as pltpu


def make_st_gcn_kernel(Cout, K, kt, TV, neg_slope=0.2):
    """Build the per-batch-element kernel (grid axis 0 = batch)."""

    def kernel(x_ref, b_ref, r_ref, wg_ref, bg_ref, wt_ref, bt_ref,
               wr_ref, br_ref, o_ref):
        x = x_ref[0]                                                   # (Cin, TV)

        # ---- GCN 1x1 conv over channels: one dot over the full time slab ----
        y = jnp.dot(wg_ref[...], x,
                    preferred_element_type=jnp.float32) + bg_ref[...]  # (K*Cout, TV)

        # ---- graph contraction fused with the kt temporal shifts ----
        # B[dt, k] is block_diag(A[k] x T) pre-shifted by (dt - pad) time
        # steps with zero edges, so each tap slab is sum_k Y_k @ B[dt, k].
        slabs = []
        for dt in range(kt):
            acc = jnp.zeros((Cout, TV), jnp.float32)
            for k in range(K):
                acc = acc + jnp.dot(y[k * Cout:(k + 1) * Cout, :], b_ref[dt, k],
                                    preferred_element_type=jnp.float32)
            slabs.append(acc)
        stacked = jnp.concatenate(slabs, axis=0)                       # (kt*Cout, TV)

        # ---- TCN (kt,1) conv as one dot + bias, plus 1x1-conv residual ----
        s = jnp.dot(wt_ref[...], stacked,
                    preferred_element_type=jnp.float32) + bt_ref[...]  # (Cout, TV)
        s = s + jnp.dot(wr_ref[...], x,
                        preferred_element_type=jnp.float32) + br_ref[...]

        # ---- LeakyReLU(0.2) once on the whole slab ----
        s = jnp.where(s >= 0, s, neg_slope * s)

        # ---- nearest temporal resize as a dense gather matmul, single store ----
        o_ref[0] = jnp.dot(s, r_ref[...],
                           preferred_element_type=jnp.float32).astype(o_ref.dtype)

    return kernel


def st_gcn_forward(x, A, Wg, bg, Wt, bt, Wr, br, dw_t):
    """x: (N, Cin, T, V); A: (K, V, V). Returns (out (N, Cout, dw_t, V), A)."""
    N, Cin, T, V = x.shape
    K = A.shape[0]
    KC = Wg.shape[0]
    Cout = KC // K
    kt = Wt.shape[0]
    pad = (kt - 1) // 2
    TV = T * V
    OV = dw_t * V

    # nearest-neighbor source indices (PyTorch F.interpolate, mode='nearest')
    t_idx = np.minimum(np.floor(np.arange(dw_t) * (T / dw_t)), T - 1).astype(np.int32)

    # temporal-shift selectors folded with the block-diagonal graph matrices:
    # B[dt, k][ts*V + v, t*V + w] = A[k, v, w] if ts == t + (dt - pad) else 0
    shift_sel = np.zeros((kt, T, T), np.float32)
    for dt in range(kt):
        d = dt - pad
        for t in range(T):
            ts = t + d
            if 0 <= ts < T:
                shift_sel[dt, ts, t] = 1.0
    B = jnp.einsum('dst,kvw->dksvtw', jnp.asarray(shift_sel),
                   A.astype(jnp.float32)).reshape(kt, K, TV, TV)

    # nearest-resize gather matrix: R[t_idx[tn]*V + w, tn*V + w] = 1
    r_sel = np.zeros((T, dw_t), np.float32)
    r_sel[t_idx, np.arange(dw_t)] = 1.0
    R = jnp.asarray(np.kron(r_sel, np.eye(V, dtype=np.float32)))       # (TV, OV)

    # flatten TCN weight: Wt_flat[c, dt*Cout + c'] = Wt[dt, c, c']
    Wt_flat = jnp.transpose(Wt, (1, 0, 2)).reshape(Cout, kt * Cout)
    bg2 = bg.reshape(KC, 1)
    bt2 = bt.reshape(Cout, 1)
    br2 = br.reshape(Cout, 1)

    # lane-dense activation layout: (N, Cin, T*V)
    x_l = x.reshape(N, Cin, TV)

    kernel = make_st_gcn_kernel(Cout, K, kt, TV)

    out = pl.pallas_call(
        kernel,
        out_shape=jax.ShapeDtypeStruct((N, Cout, OV), x.dtype),
        grid_spec=pltpu.PrefetchScalarGridSpec(
            num_scalar_prefetch=0,
            grid=(N,),
            in_specs=[
                pl.BlockSpec((1, Cin, TV), lambda n: (n, 0, 0)),        # x (lane-dense)
                pl.BlockSpec((kt, K, TV, TV), lambda n: (0, 0, 0, 0)),  # shifted block-diag A
                pl.BlockSpec((TV, OV), lambda n: (0, 0)),               # resize gather matrix
                pl.BlockSpec((KC, Cin), lambda n: (0, 0)),              # gcn weight
                pl.BlockSpec((KC, 1), lambda n: (0, 0)),                # gcn bias
                pl.BlockSpec((Cout, kt * Cout), lambda n: (0, 0)),      # tcn weight (flattened)
                pl.BlockSpec((Cout, 1), lambda n: (0, 0)),              # tcn bias
                pl.BlockSpec((Cout, Cin), lambda n: (0, 0)),            # residual weight
                pl.BlockSpec((Cout, 1), lambda n: (0, 0)),              # residual bias
            ],
            out_specs=pl.BlockSpec((1, Cout, OV), lambda n: (n, 0, 0)),
        ),
        compiler_params=pltpu.CompilerParams(dimension_semantics=("parallel",)),
    )(x_l, B, R, Wg, bg2, Wt_flat, bt2, Wr, br2)

    return out.reshape(N, Cout, dw_t, V), A

    # TODO(synk): downsample_s (graph.map node gather) is only active when
    # dw_s=True; default config (dw_s=False) is what is implemented here.


def st_gcn_ref(x, A, Wg, bg, Wt, bt, Wr, br, dw_t):
    """Pure-JAX reference mirroring the PyTorch forward."""
    N, Cin, T, V = x.shape
    K = A.shape[0]
    KC = Wg.shape[0]
    Cout = KC // K
    kt = Wt.shape[0]
    pad = (kt - 1) // 2

    y = jnp.einsum('oc,nctv->notv', Wg, x) + bg.reshape(1, KC, 1, 1)
    y = y.reshape(N, K, Cout, T, V)
    g = jnp.einsum('nkctv,kvw->nctw', y, A)

    gp = jnp.pad(g, ((0, 0), (0, 0), (pad, pad), (0, 0)))
    out = jnp.zeros((N, Cout, T, V), jnp.float32)
    for dt in range(kt):
        out = out + jnp.einsum('oc,nctv->notv', Wt[dt], gp[:, :, dt:dt + T, :])
    out = out + bt.reshape(1, Cout, 1, 1)

    res = jnp.einsum('oc,nctv->notv', Wr, x) + br.reshape(1, Cout, 1, 1)
    s = out + res

    idx = np.minimum(np.floor(np.arange(dw_t) * (T / dw_t)).astype(np.int64), T - 1)
    s = s[:, :, idx, :]
    return jnp.where(s >= 0, s, 0.2 * s), A


if __name__ == "__main__":
    # module config: in_channels=4, out_channels=8, kernel_size=([3]*4, [2]*4),
    # lvl=3, stride=1, residual=True (Cin != Cout -> 1x1-conv residual),
    # dw_s=False, dw_t=16.
    N, Cin, Cout, T, V, K, kt, dw_t = 2, 4, 8, 8, 16, 2, 3, 16

    key = jax.random.PRNGKey(0)
    ks = jax.random.split(key, 8)
    x = jax.random.normal(ks[0], (N, Cin, T, V), jnp.float32)
    A = jax.random.normal(ks[1], (K, V, V), jnp.float32) * 0.1
    Wg = jax.random.normal(ks[2], (K * Cout, Cin), jnp.float32) * 0.2   # gcn 1x1 conv
    bg = jax.random.normal(ks[3], (K * Cout,), jnp.float32) * 0.1
    Wt = jax.random.normal(ks[4], (kt, Cout, Cout), jnp.float32) * 0.2  # tcn (kt,1) conv
    bt = jax.random.normal(ks[5], (Cout,), jnp.float32) * 0.1
    Wr = jax.random.normal(ks[6], (Cout, Cin), jnp.float32) * 0.2       # residual 1x1 conv
    br = jax.random.normal(ks[7], (Cout,), jnp.float32) * 0.1

    out, A_out = st_gcn_forward(x, A, Wg, bg, Wt, bt, Wr, br, dw_t)
    out = jax.block_until_ready(out)

    ref, _ = st_gcn_ref(x, A, Wg, bg, Wt, bt, Wr, br, dw_t)
    np.testing.assert_allclose(np.asarray(out), np.asarray(ref), rtol=1e-5, atol=1e-5)
    print("KERNEL_OK")
</pallas_src>

<mosaic_0001>
module attributes {stable_mosaic.version = 11 : i64} {
  func.func @kernel(%arg0: i32, %arg1: memref<1x4x128xf32, #tpu.memory_space<vmem>>, %arg2: memref<3x2x128x128xf32, #tpu.memory_space<vmem>>, %arg3: memref<128x256xf32, #tpu.memory_space<vmem>>, %arg4: memref<16x4xf32, #tpu.memory_space<vmem>>, %arg5: memref<16x1xf32, #tpu.memory_space<vmem>>, %arg6: memref<8x24xf32, #tpu.memory_space<vmem>>, %arg7: memref<8x1xf32, #tpu.memory_space<vmem>>, %arg8: memref<8x4xf32, #tpu.memory_space<vmem>>, %arg9: memref<8x1xf32, #tpu.memory_space<vmem>>, %arg10: memref<1x8x256xf32, #tpu.memory_space<vmem>>) attributes {dimension_semantics = [#tpu.dimension_semantics<parallel>], iteration_bounds = array<i64: 2>, scalar_prefetch = 0 : i64, scratch_operands = 0 : i64, tpu.core_type = #tpu.core_type<tc>, window_params = [{transform_indices = @transform_0, window_bounds = array<i64: 1, 4, 128>}, {pipeline_mode = #tpu.pipeline_mode<synchronous>, transform_indices = @transform_1, window_bounds = array<i64: 3, 2, 128, 128>}, {pipeline_mode = #tpu.pipeline_mode<synchronous>, transform_indices = @transform_2, window_bounds = array<i64: 128, 256>}, {pipeline_mode = #tpu.pipeline_mode<synchronous>, transform_indices = @transform_3, window_bounds = array<i64: 16, 4>}, {pipeline_mode = #tpu.pipeline_mode<synchronous>, transform_indices = @transform_4, window_bounds = array<i64: 16, 1>}, {pipeline_mode = #tpu.pipeline_mode<synchronous>, transform_indices = @transform_5, window_bounds = array<i64: 8, 24>}, {pipeline_mode = #tpu.pipeline_mode<synchronous>, transform_indices = @transform_6, window_bounds = array<i64: 8, 1>}, {pipeline_mode = #tpu.pipeline_mode<synchronous>, transform_indices = @transform_7, window_bounds = array<i64: 8, 4>}, {pipeline_mode = #tpu.pipeline_mode<synchronous>, transform_indices = @transform_8, window_bounds = array<i64: 8, 1>}, {transform_indices = @transform_9, window_bounds = array<i64: 1, 8, 256>}]} {
    %c0 = arith.constant 0 : index
    %c0_0 = arith.constant 0 : index
    %c0_1 = arith.constant 0 : index
    %0 = vector.load %arg1[%c0, %c0_0, %c0_1] : memref<1x4x128xf32, #tpu.memory_space<vmem>>, vector<1x4x128xf32>
    %1 = vector.shape_cast %0 : vector<1x4x128xf32> to vector<4x128xf32>
    %c0_2 = arith.constant 0 : index
    %c0_3 = arith.constant 0 : index
    %2 = vector.load %arg4[%c0_2, %c0_3] : memref<16x4xf32, #tpu.memory_space<vmem>>, vector<16x4xf32>
    %cst = arith.constant dense<0.000000e+00> : vector<16x128xf32>
    %3 = tpu.matmul %2, %1, %cst {dimension_numbers = #tpu.dot_dimension_numbers<[1], [0], [0], [1], [0, 0, 1, 1], [], []>} : vector<16x4xf32>, vector<4x128xf32>, vector<16x128xf32> -> vector<16x128xf32>
    %c0_4 = arith.constant 0 : index
    %c0_5 = arith.constant 0 : index
    %4 = vector.load %arg5[%c0_4, %c0_5] : memref<16x1xf32, #tpu.memory_space<vmem>>, vector<16x1xf32>
    %5 = vector.broadcast %4 : vector<16x1xf32> to vector<16x128xf32>
    %6 = arith.addf %3, %5 : vector<16x128xf32>
    %cst_6 = arith.constant 0.000000e+00 : f32
    %7 = vector.broadcast %cst_6 : f32 to vector<8x128xf32>
    %8 = vector.extract_strided_slice %6 {offsets = [0, 0], sizes = [8, 128], strides = [1, 1]} : vector<16x128xf32> to vector<8x128xf32>
    %c0_7 = arith.constant 0 : index
    %c0_8 = arith.constant 0 : index
    %c0_9 = arith.constant 0 : index
    %c0_10 = arith.constant 0 : index
    %9 = vector.load %arg2[%c0_7, %c0_8, %c0_9, %c0_10] : memref<3x2x128x128xf32, #tpu.memory_space<vmem>>, vector<1x1x128x128xf32>
    %10 = vector.shape_cast %9 : vector<1x1x128x128xf32> to vector<128x128xf32>
    %cst_11 = arith.constant dense<0.000000e+00> : vector<8x128xf32>
    %11 = tpu.matmul %8, %10, %cst_11 {dimension_numbers = #tpu.dot_dimension_numbers<[1], [0], [0], [1], [0, 0, 1, 1], [], []>} : vector<8x128xf32>, vector<128x128xf32>, vector<8x128xf32> -> vector<8x128xf32>
    %12 = arith.addf %7, %11 : vector<8x128xf32>
    %13 = vector.extract_strided_slice %6 {offsets = [8, 0], sizes = [8, 128], strides = [1, 1]} : vector<16x128xf32> to vector<8x128xf32>
    %c0_12 = arith.constant 0 : index
    %c1 = arith.constant 1 : index
    %c0_13 = arith.constant 0 : index
    %c0_14 = arith.constant 0 : index
    %14 = vector.load %arg2[%c0_12, %c1, %c0_13, %c0_14] : memref<3x2x128x128xf32, #tpu.memory_space<vmem>>, vector<1x1x128x128xf32>
    %15 = vector.shape_cast %14 : vector<1x1x128x128xf32> to vector<128x128xf32>
    %cst_15 = arith.constant dense<0.000000e+00> : vector<8x128xf32>
    %16 = tpu.matmul %13, %15, %cst_15 {dimension_numbers = #tpu.dot_dimension_numbers<[1], [0], [0], [1], [0, 0, 1, 1], [], []>} : vector<8x128xf32>, vector<128x128xf32>, vector<8x128xf32> -> vector<8x128xf32>
    %17 = arith.addf %12, %16 : vector<8x128xf32>
    %cst_16 = arith.constant 0.000000e+00 : f32
    %18 = vector.broadcast %cst_16 : f32 to vector<8x128xf32>
    %19 = vector.extract_strided_slice %6 {offsets = [0, 0], sizes = [8, 128], strides = [1, 1]} : vector<16x128xf32> to vector<8x128xf32>
    %c1_17 = arith.constant 1 : index
    %c0_18 = arith.constant 0 : index
    %c0_19 = arith.constant 0 : index
    %c0_20 = arith.constant 0 : index
    %20 = vector.load %arg2[%c1_17, %c0_18, %c0_19, %c0_20] : memref<3x2x128x128xf32, #tpu.memory_space<vmem>>, vector<1x1x128x128xf32>
    %21 = vector.shape_cast %20 : vector<1x1x128x128xf32> to vector<128x128xf32>
    %cst_21 = arith.constant dense<0.000000e+00> : vector<8x128xf32>
    %22 = tpu.matmul %19, %21, %cst_21 {dimension_numbers = #tpu.dot_dimension_numbers<[1], [0], [0], [1], [0, 0, 1, 1], [], []>} : vector<8x128xf32>, vector<128x128xf32>, vector<8x128xf32> -> vector<8x128xf32>
    %23 = arith.addf %18, %22 : vector<8x128xf32>
    %24 = vector.extract_strided_slice %6 {offsets = [8, 0], sizes = [8, 128], strides = [1, 1]} : vector<16x128xf32> to vector<8x128xf32>
    %c1_22 = arith.constant 1 : index
    %c1_23 = arith.constant 1 : index
    %c0_24 = arith.constant 0 : index
    %c0_25 = arith.constant 0 : index
    %25 = vector.load %arg2[%c1_22, %c1_23, %c0_24, %c0_25] : memref<3x2x128x128xf32, #tpu.memory_space<vmem>>, vector<1x1x128x128xf32>
    %26 = vector.shape_cast %25 : vector<1x1x128x128xf32> to vector<128x128xf32>
    %cst_26 = arith.constant dense<0.000000e+00> : vector<8x128xf32>
    %27 = tpu.matmul %24, %26, %cst_26 {dimension_numbers = #tpu.dot_dimension_numbers<[1], [0], [0], [1], [0, 0, 1, 1], [], []>} : vector<8x128xf32>, vector<128x128xf32>, vector<8x128xf32> -> vector<8x128xf32>
    %28 = arith.addf %23, %27 : vector<8x128xf32>
    %cst_27 = arith.constant 0.000000e+00 : f32
    %29 = vector.broadcast %cst_27 : f32 to vector<8x128xf32>
    %30 = vector.extract_strided_slice %6 {offsets = [0, 0], sizes = [8, 128], strides = [1, 1]} : vector<16x128xf32> to vector<8x128xf32>
    %c2 = arith.constant 2 : index
    %c0_28 = arith.constant 0 : index
    %c0_29 = arith.constant 0 : index
    %c0_30 = arith.constant 0 : index
    %31 = vector.load %arg2[%c2, %c0_28, %c0_29, %c0_30] : memref<3x2x128x128xf32, #tpu.memory_space<vmem>>, vector<1x1x128x128xf32>
    %32 = vector.shape_cast %31 : vector<1x1x128x128xf32> to vector<128x128xf32>
    %cst_31 = arith.constant dense<0.000000e+00> : vector<8x128xf32>
    %33 = tpu.matmul %30, %32, %cst_31 {dimension_numbers = #tpu.dot_dimension_numbers<[1], [0], [0], [1], [0, 0, 1, 1], [], []>} : vector<8x128xf32>, vector<128x128xf32>, vector<8x128xf32> -> vector<8x128xf32>
    %34 = arith.addf %29, %33 : vector<8x128xf32>
    %35 = vector.extract_strided_slice %6 {offsets = [8, 0], sizes = [8, 128], strides = [1, 1]} : vector<16x128xf32> to vector<8x128xf32>
    %c2_32 = arith.constant 2 : index
    %c1_33 = arith.constant 1 : index
    %c0_34 = arith.constant 0 : index
    %c0_35 = arith.constant 0 : index
    %36 = vector.load %arg2[%c2_32, %c1_33, %c0_34, %c0_35] : memref<3x2x128x128xf32, #tpu.memory_space<vmem>>, vector<1x1x128x128xf32>
    %37 = vector.shape_cast %36 : vector<1x1x128x128xf32> to vector<128x128xf32>
    %cst_36 = arith.constant dense<0.000000e+00> : vector<8x128xf32>
    %38 = tpu.matmul %35, %37, %cst_36 {dimension_numbers = #tpu.dot_dimension_numbers<[1], [0], [0], [1], [0, 0, 1, 1], [], []>} : vector<8x128xf32>, vector<128x128xf32>, vector<8x128xf32> -> vector<8x128xf32>
    %39 = arith.addf %34, %38 : vector<8x128xf32>
    %40 = tpu.concatenate %17, %28, %39 in 0 : vector<8x128xf32>, vector<8x128xf32>, vector<8x128xf32> -> vector<24x128xf32>
    %c0_37 = arith.constant 0 : index
    %c0_38 = arith.constant 0 : index
    %41 = vector.load %arg6[%c0_37, %c0_38] : memref<8x24xf32, #tpu.memory_space<vmem>>, vector<8x24xf32>
    %cst_39 = arith.constant dense<0.000000e+00> : vector<8x128xf32>
    %42 = tpu.matmul %41, %40, %cst_39 {dimension_numbers = #tpu.dot_dimension_numbers<[1], [0], [0], [1], [0, 0, 1, 1], [], []>} : vector<8x24xf32>, vector<24x128xf32>, vector<8x128xf32> -> vector<8x128xf32>
    %c0_40 = arith.constant 0 : index
    %c0_41 = arith.constant 0 : index
    %43 = vector.load %arg7[%c0_40, %c0_41] : memref<8x1xf32, #tpu.memory_space<vmem>>, vector<8x1xf32>
    %44 = vector.broadcast %43 : vector<8x1xf32> to vector<8x128xf32>
    %45 = arith.addf %42, %44 : vector<8x128xf32>
    %c0_42 = arith.constant 0 : index
    %c0_43 = arith.constant 0 : index
    %46 = vector.load %arg8[%c0_42, %c0_43] : memref<8x4xf32, #tpu.memory_space<vmem>>, vector<8x4xf32>
    %cst_44 = arith.constant dense<0.000000e+00> : vector<8x128xf32>
    %47 = tpu.matmul %46, %1, %cst_44 {dimension_numbers = #tpu.dot_dimension_numbers<[1], [0], [0], [1], [0, 0, 1, 1], [], []>} : vector<8x4xf32>, vector<4x128xf32>, vector<8x128xf32> -> vector<8x128xf32>
    %48 = arith.addf %45, %47 : vector<8x128xf32>
    %c0_45 = arith.constant 0 : index
    %c0_46 = arith.constant 0 : index
    %49 = vector.load %arg9[%c0_45, %c0_46] : memref<8x1xf32, #tpu.memory_space<vmem>>, vector<8x1xf32>
    %50 = vector.broadcast %49 : vector<8x1xf32> to vector<8x128xf32>
    %51 = arith.addf %48, %50 : vector<8x128xf32>
    %cst_47 = arith.constant 0.000000e+00 : f32
    %52 = vector.broadcast %cst_47 : f32 to vector<8x128xf32>
    %53 = arith.cmpf oge, %51, %52 : vector<8x128xf32>
    %cst_48 = arith.constant 2.000000e-01 : f32
    %54 = vector.broadcast %cst_48 : f32 to vector<8x128xf32>
    %55 = arith.mulf %54, %51 : vector<8x128xf32>
    %56 = arith.select %53, %51, %55 : vector<8x128xi1>, vector<8x128xf32>
    %c0_49 = arith.constant 0 : index
    %c0_50 = arith.constant 0 : index
    %57 = vector.load %arg3[%c0_49, %c0_50] : memref<128x256xf32, #tpu.memory_space<vmem>>, vector<128x256xf32>
    %cst_51 = arith.constant dense<0.000000e+00> : vector<8x256xf32>
    %58 = tpu.matmul %56, %57, %cst_51 {dimension_numbers = #tpu.dot_dimension_numbers<[1], [0], [0], [1], [0, 0, 1, 1], [], []>} : vector<8x128xf32>, vector<128x256xf32>, vector<8x256xf32> -> vector<8x256xf32>
    %c0_52 = arith.constant 0 : index
    %c0_53 = arith.constant 0 : index
    %c0_54 = arith.constant 0 : index
    %59 = vector.load %arg10[%c0_52, %c0_53, %c0_54] : memref<1x8x256xf32, #tpu.memory_space<vmem>>, vector<1x8x256xf32>
    %60 = vector.shape_cast %59 : vector<1x8x256xf32> to vector<8x256xf32>
    %61 = vector.shape_cast %58 : vector<8x256xf32> to vector<1x8x256xf32>
    tpu.vector_store %arg10[%c0_52, %c0_53, %c0_54], %61 {strides = array<i32>} : memref<1x8x256xf32, #tpu.memory_space<vmem>>, vector<1x8x256xf32>,
    return
  }
  func.func @transform_0(%arg0: i32) -> (i32, i32, i32) {
    %c0_i32 = arith.constant 0 : i32
    %c0_i32_0 = arith.constant 0 : i32
    %c0_i32_1 = arith.constant 0 : i32
    return %arg0, %c0_i32, %c0_i32_0 : i32, i32, i32
  }
  func.func @transform_1(%arg0: i32) -> (i32, i32, i32, i32) {
    %c0_i32 = arith.constant 0 : i32
    %c0_i32_0 = arith.constant 0 : i32
    %c0_i32_1 = arith.constant 0 : i32
    %c0_i32_2 = arith.constant 0 : i32
    %c0_i32_3 = arith.constant 0 : i32
    return %c0_i32, %c0_i32_0, %c0_i32_1, %c0_i32_2 : i32, i32, i32, i32
  }
  func.func @transform_2(%arg0: i32) -> (i32, i32) {
    %c0_i32 = arith.constant 0 : i32
    %c0_i32_0 = arith.constant 0 : i32
    %c0_i32_1 = arith.constant 0 : i32
    return %c0_i32, %c0_i32_0 : i32, i32
  }
  func.func @transform_3(%arg0: i32) -> (i32, i32) {
    %c0_i32 = arith.constant 0 : i32
    %c0_i32_0 = arith.constant 0 : i32
    %c0_i32_1 = arith.constant 0 : i32
    return %c0_i32, %c0_i32_0 : i32, i32
  }
  func.func @transform_4(%arg0: i32) -> (i32, i32) {
    %c0_i32 = arith.constant 0 : i32
    %c0_i32_0 = arith.constant 0 : i32
    %c0_i32_1 = arith.constant 0 : i32
    return %c0_i32, %c0_i32_0 : i32, i32
  }
  func.func @transform_5(%arg0: i32) -> (i32, i32) {
    %c0_i32 = arith.constant 0 : i32
    %c0_i32_0 = arith.constant 0 : i32
    %c0_i32_1 = arith.constant 0 : i32
    return %c0_i32, %c0_i32_0 : i32, i32
  }
  func.func @transform_6(%arg0: i32) -> (i32, i32) {
    %c0_i32 = arith.constant 0 : i32
    %c0_i32_0 = arith.constant 0 : i32
    %c0_i32_1 = arith.constant 0 : i32
    return %c0_i32, %c0_i32_0 : i32, i32
  }
  func.func @transform_7(%arg0: i32) -> (i32, i32) {
    %c0_i32 = arith.constant 0 : i32
    %c0_i32_0 = arith.constant 0 : i32
    %c0_i32_1 = arith.constant 0 : i32
    return %c0_i32, %c0_i32_0 : i32, i32
  }
  func.func @transform_8(%arg0: i32) -> (i32, i32) {
    %c0_i32 = arith.constant 0 : i32
    %c0_i32_0 = arith.constant 0 : i32
    %c0_i32_1 = arith.constant 0 : i32
    return %c0_i32, %c0_i32_0 : i32, i32
  }
  func.func @transform_9(%arg0: i32) -> (i32, i32, i32) {
    %c0_i32 = arith.constant 0 : i32
    %c0_i32_0 = arith.constant 0 : i32
    %c0_i32_1 = arith.constant 0 : i32
    return %arg0, %c0_i32, %c0_i32_0 : i32, i32, i32
  }
}

</mosaic_0001>

<bundles_post_ra>
// kernel: tpu_custom_call.1
= control target key start
LH: loop header
LB: loop body
LE: loop exit
PB: predicated region body
PF: predicated region fallthrough
CT: control target
= control target key end

     0   :  { %14 = vsyncpa [#allocation3], 0  ;;  %s2256_s0 = inlined_call_operand.vmem [shape: f32[2,4,128], index: 0, kind: input, shape index: {}]   ;;  %s2257_s1 = inlined_call_operand.hbm [shape: f32[3,2,128,128], index: 1, kind: input, shape index: {}]   ;;  %s2258_s2 = inlined_call_operand.hbm [shape: f32[128,256], index: 2, kind: input, shape index: {}]   ;;  %s2259_s3 = inlined_call_operand.vmem [shape: f32[16,4], index: 3, kind: input, shape index: {}]   ;;  %s2260_s4 = inlined_call_operand.vmem [shape: f32[16,1], index: 4, kind: input, shape index: {}]   ;;  %s2261_s5 = inlined_call_operand.vmem [shape: f32[8,24], index: 5, kind: input, shape index: {}]   ;;  %s2262_s6 = inlined_call_operand.vmem [shape: f32[8,1], index: 6, kind: input, shape index: {}]   ;;  %s2263_s7 = inlined_call_operand.vmem [shape: f32[8,4], index: 7, kind: input, shape index: {}]   ;;  %s2264_s8 = inlined_call_operand.vmem [shape: f32[8,1], index: 8, kind: input, shape index: {}]   ;;  %s2265_s9 = inlined_call_operand.hbm [shape: f32[2,8,256], index: 9, kind: output, shape index: {}]  }
   0x1   :  { %15 = vsyncpa [#allocation6], 0 }
   0x2   :  { %16 = vsyncpa [#allocation4], 0 }
   0x3   :  { %18 = vsyncpa [#allocation4 + $0x1], 0  ;;  %s1960_s30 = smov 0   ;;  %s1962_s10 = smov 0  }
   0x4   :  { %s1964_s11 = smov 0   ;;  %s1966_s12 = smov 0  }
   0x5 LB: > { %s1981_s13 = sadd.s32 4294967295, %s1898_s12   ;;  %s1347_s14 = sadd.s32 4294967294, %s1898_s12   ;;  %s1898_s12 = sphi %s1966_s12, %s2281_s12   ;;  %s1894_s11 = sphi %s1964_s11, %s2280_s11   ;;  %s1890_s10 = sphi %s1962_s10, %s2279_s10   ;;  %s1886_s30 = sphi %s1960_s30, %s2278_s30  }
   0x6   : > { %s1985_s15 = sadd.s32 1, %s1898_s12   ;;  %s225_s16 = sadd.s32 1, %s1894_s11 }
   0x7   : > { %s222_s17 = ssub.s32 %s1898_s12, %s1985_s15  ;;  %p235_p0 = scmp.ne.s32.totalorder %s1894_s11, %s1890_s10 }
   0x8   : > { %p223_p1 = scmp.eq.s32.totalorder %s222_s17, 0  ;;  %p236_p2 = scmp.eq.s32.totalorder %s1981_s13, 1 }
   0x9   : > { %p241_p3 = scmp.ne.s32.totalorder %s1890_s10, %s1886_s30  ;;  %p242_p4 = scmp.eq.s32.totalorder %s1347_s14, 1 }
   0xa   : > { %s1996_s18 = scalar_select %p223_p1, %s1894_s11, %s225_s16  }
   0xb   : > { %p1998_p5 = por %p236_p2, %p235_p0  ;;  %p2002_p6 = por %p242_p4, %p241_p3 }
   0xc   : > { %2267 = sst [smem:[#allocation11_spill]] %s1996_s18  ;;  %p1348_p7 = scmp.ge.s32.totalorder %s1898_s12, 1 }
   0xd   : > { %s2269_s20 = scalar_select %p2002_p6, 1, 0 }
   0xe   : > { %p249_p8 = scmp.lt.s32.totalorder %s1898_s12, 3  ;;  %p2266_p9 = scmp.eq.s32.totalorder %s1981_s13, 0 }
   0xf   : > { %s1900_s22 = smov [#allocation2]   ;;  %s1901_s25 = smov [#allocation5]  }
  0x10   : > { %p2009_p10 = pnand %p1348_p7, %p249_p8  ;;  %s261_s23 = sshll.u32 %s1900_s22, 4  ;;  %s262_s23 = int_to_ptr.vmem [resolvable:$true] %s261_s23 }
  0x11   : > { %s274_s26 = sshll.u32 %s1901_s25, 4  ;;  %s1789_s27 = scalar_lea.vmem %s262_s23, 12288  ;;  %s275_s26 = int_to_ptr.vmem [resolvable:$true] %s274_s26 }
  0x12   : > { %p1719_p11 = pneg %p2009_p10  ;;  %p1790_p0 = scmp.ne.s32.totalorder %s262_s23, %s1789_s27 }
  0x13   : > { %p1797_p3 = scmp.lt.s32.totalorder %s262_s23, %s262_s23  ;;  %p1798_p4 = scmp.lt.s32.totalorder %s1789_s27, %s1789_s27 }
  0x14   : > { %p2017_p12 = pnand %p2266_p9, %p1719_p11 }
  0x15   : > { %p1799_p7 = por %p1798_p4, %p1797_p3 }
  0x16   : > { %p1780_p13 = pneg %p2017_p12 }
  0x18   : > { %p1792_p1 = pnand %p1790_p0, %p1780_p13 }
  0x1a   : > { %p1793_p2 = pneg %p1792_p1 }
  0x1c   : > { %p1800_p8 = pnand %p1799_p7, %p1793_p2 }
  0x1e   : > { %1803 = shalt.err (!%p1800_p8)
}
  0x1f   : > { %s1902_s28 = smov 128   ;;  %s1903_s29 = smov 8  }
  0x20   : > { %1722 = dma.hbm_to_vmem [thread:$0]  (!%p2017_p12), %s2257_s1, 12288, %s262_s23, [#allocation3], %s1902_s28, %s1902_s28, %s1903_s29  }
  0x21   : > { %s1815_s17 = scalar_lea.vmem %s275_s26, 4096  ;;  %p1823_p9 = scmp.lt.s32.totalorder %s275_s26, %s275_s26 }
  0x22   : > { %p1816_p11 = scmp.ne.s32.totalorder %s275_s26, %s1815_s17  ;;  %p1824_p6 = scmp.lt.s32.totalorder %s1815_s17, %s1815_s17 }
  0x24   : > { %p1818_p0 = pnand %p1816_p11, %p1780_p13  ;;  %p1825_p3 = por %p1824_p6, %p1823_p9 }
  0x26   : > { %p1819_p1 = pneg %p1818_p0 }
  0x28   : > { %p1826_p2 = pnand %p1825_p3, %p1819_p1 }
  0x2a   : > { %1829 = shalt.err (!%p1826_p2)
}
  0x2b   : > { %s1904_s22 = smov 256   ;;  %s1905_s25 = smov 16  }
  0x2c   : > { %1725 = dma.hbm_to_vmem [thread:$0]  (!%p2017_p12), %s2258_s2, 4096, %s275_s26, [#allocation6], %s1904_s22, %s1904_s22, %s1905_s25  }
  0x2d   : > { %315 = sbr.rel (%p2009_p10) target bundleno = 938 (0x3aa), region = 56  ;;  %p2272_p4 = scmp.eq.s32.totalorder (!%p2009_p10), %s1981_s13, 0 }
  0x32   : > { %1873 = dma.done.wait (%p2272_p4), [#allocation3], 12288   ;;  %p2273_p13 = pmov %p2272_p4 }
  0x33   : > { %p2274_p6 = pmov %p2272_p4 }
  0x34   : > { %1875 = vsyncadd (%p2273_p13), [#allocation3], 4294955008 }
  0x35   : > { %1877 = dma.done.wait (%p2274_p6), [#allocation6], 4096   ;;  %p2275_p9 = pmov %p2272_p4 }
  0x36   : > { %p354_p7 = scmp.lt.s32.totalorder %s1981_s13, 1  ;;  %v1906_v0 = vmov 0   ;;  %v1907_v1 = vmov 0.0   ;;  %vm380_vm0 = vcmask 1043456   ;;  %vm373_vm1 = vcmask 31744   ;;  %v359_v3 = vld [vmem:[%s2259_s3] sm:$0xff] }
  0x37   : > { %1879 = vsyncadd (%p2275_p9), [#allocation6], 4294963200  ;;  %1776 = vset.pattern.permute.xlu0 %v1906_v0  ;;  %1777 = vset.pattern.permute.xlu1 %v1906_v0  ;;  %v360_v4 = vld [vmem:[%s2259_s3 + $0x8] sm:$0xff]  ;;  %v361_v5 = vld [vmem:[%s2260_s4] sm:$0xff]  ;;  %vm1908_vm2 = vmmov 0   ;;  %vm987_vm3 = vcmask 195584  }
  0x38   : > { %s355_s18 = scalar_select %p354_p7, %s1981_s13, 1  ;;  %1520 = vmatprep.subr.mxu0 %v1907_v1  ;;  %1482 = vmatprep.mubr.msk.f32.mxu1 %vm373_vm1, %v359_v3  ;;  %v491_v6 = vld [vmem:[#allocation2 + $0xf8] sm:$0xff]  ;;  %v362_v8 = vld [vmem:[%s2260_s4 + $0x8] sm:$0xff]  ;;  %v490_v9 = vld [vmem:[#allocation2 + $0xf0] sm:$0xff] }
  0x39   : > { %365 = vperm.xlu0 %1776, %v361_v5   ;;  %v474_v7 = vld [vmem:[#allocation2 + $0x78] sm:$0xff]  ;;  %v473_v10 = vld [vmem:[#allocation2 + $0x70] sm:$0xff]  ;;  %v489_v11 = vld [vmem:[#allocation2 + $0xe8] sm:$0xff]  ;;  %1552 = vmatprep.mubr.msk.f32.mxu0 %vm1908_vm2, %v1907_v1  ;;  %s351_s16 = sand.u32 1, %s1890_s10   ;;  %s1368_s27 = sshll.u32 %s1981_s13, 8 }
  0x3a   : > { %s1356_s21 = sshll.u32 %s355_s18, 2  ;;  %1521 = vmatpush3.msra.mxu0 %v474_v7  ;;  %v472_v12 = vld [vmem:[#allocation2 + $0x68] sm:$0xff]  ;;  %v488_v13 = vld [vmem:[#allocation2 + $0xe0] sm:$0xff]  ;;  %v487_v15 = vld [vmem:[#allocation2 + $0xd8] sm:$0xff]  ;;  %s1355_s17 = sshll.u32 %s351_s16, 4 }
  0x3b   : > { %s357_s26 = scalar_lea.vmem %s2256_s0, %s1356_s21  ;;  %1522 = vmatprep.subr.mxu0 %v1907_v1  ;;  %v471_v14 = vld [vmem:[#allocation2 + $0x60] sm:$0xff]  ;;  %v470_v16 = vld [vmem:[#allocation2 + $0x58] sm:$0xff]  ;;  %v486_v17 = vld [vmem:[#allocation2 + $0xd0] sm:$0xff]  ;;  %s353_s22 = scalar_lea.vmem [#allocation7], %s1355_s17 }
  0x3c   : > { %v2055_v2 = vld [vmem:[%s357_s26] sm:$0xf]  ;;  %1523 = vmatpush3.msra.mxu0 %v473_v10  ;;  %v469_v18 = vld [vmem:[#allocation2 + $0x50] sm:$0xff]  ;;  %v485_v19 = vld [vmem:[#allocation2 + $0xc8] sm:$0xff]  ;;  %s1266_s25 = sshll.u32 %s353_s22, 4  ;;  %s1264_s23 = scalar_lea.hbm %s2265_s9, %s1368_s27  ;;  %s2218_s25 = int_to_ptr.vmem [resolvable:$true] %s1266_s25 }
  0x3d   : > { %1480 = vmatprep.subr.msk.mxu1 %vm380_vm0, %v2055_v2  ;;  %370 = vperm.xlu0 %1776, %v362_v8   ;;  %v468_v20 = vld [vmem:[#allocation2 + $0x48] sm:$0xff]  ;;  %v484_v21 = vld [vmem:[#allocation2 + $0xc0] sm:$0xff]  ;;  %v483_v23 = vld [vmem:[#allocation2 + $0xb8] sm:$0xff]  ;;  %s1252_s24 = scalar_lea.sflag [#allocation4], %s351_s16  ;;  %s1830_s26 = scalar_lea.vmem %s2218_s25, 256 }
  0x3e   : > { %1481 = vmatpush3.msk.msra.mxu1 %vm380_vm0, %v2055_v2  ;;  %1524 = vmatprep.subr.mxu0 %v1907_v1  ;;  %v467_v22 = vld [vmem:[#allocation2 + $0x40] sm:$0xff]  ;;  %v466_v24 = vld [vmem:[#allocation2 + $0x38] sm:$0xff]  ;;  %v482_v25 = vld [vmem:[#allocation2 + $0xb0] sm:$0xff]  ;;  %p1831_p10 = scmp.ne.s32.totalorder %s2218_s25, %s1830_s26  ;;  %s1909_s13 = smov [#allocation7]  }
  0x3f   : > { %1483 = vmatmul.mubr.msk.f32.vlgmr.msra.gmra.mxu1 %vm373_vm1, %v360_v4  ;;  %1485 = vmatprep.subr.mxu1 %v1907_v1  ;;  %v465_v26 = vld [vmem:[#allocation2 + $0x30] sm:$0xff]  ;;  %v481_v27 = vld [vmem:[#allocation2 + $0xa8] sm:$0xff]  ;;  %v480_v29 = vld [vmem:[#allocation2 + $0xa0] sm:$0xff]  ;;  %s1834_s28 = sshll.u32 %s1909_s13, 4  ;;  %s1835_s28 = int_to_ptr.vmem [resolvable:$false] %s1834_s28 }
  0x40   : > { %1486 = vmatpush3.msra.mxu1 %v491_v6  ;;  %1525 = vmatpush3.msra.mxu0 %v472_v12  ;;  %v464_v28 = vld [vmem:[#allocation2 + $0x28] sm:$0xff]  ;;  %v463_v30 = vld [vmem:[#allocation2 + $0x20] sm:$0xff]  ;;  %v479_v31 = vld [vmem:[#allocation2 + $0x98] sm:$0xff]  ;;  %p1832_p12 = pnand %p1831_p10, %p1998_p5  ;;  %s1836_s29 = scalar_lea.vmem %s1835_s28, 512 }
  0x41   : > { %1487 = vmatprep.subr.mxu1 %v1907_v1  ;;  %1526 = vmatprep.subr.mxu0 %v1907_v1  ;;  %v462_v32 = vld [vmem:[#allocation2 + $0x18] sm:$0xff]  ;;  %v478_v33 = vld [vmem:[#allocation2 + $0x90] sm:$0xff]  ;;  %v477_v35 = vld [vmem:[#allocation2 + $0x88] sm:$0xff]  ;;  %p1837_p11 = scmp.lt.s32.totalorder %s2218_s25, %s1835_s28  ;;  %p1838_p0 = scmp.lt.s32.totalorder %s1836_s29, %s1830_s26 }
  0x42   : > { %1488 = vmatpush3.msra.mxu1 %v490_v9  ;;  %1527 = vmatpush3.msra.mxu0 %v471_v14  ;;  %v461_v34 = vld [vmem:[#allocation2 + $0x10] sm:$0xff]  ;;  %v476_v36 = vld [vmem:[#allocation2 + $0x80] sm:$0xff]  ;;  %v460_v37 = vld [vmem:[#allocation2 + $0x8] sm:$0xff]  ;;  %p1833_p8 = pneg %p1832_p12 }
  0x43   : > { %1489 = vmatprep.subr.mxu1 %v1907_v1  ;;  %1528 = vmatprep.subr.mxu0 %v1907_v1  ;;  %v459_v38 = vld [vmem:[#allocation2] sm:$0xff]  ;;  %v665_v43 = vld [vmem:[#allocation2 + $0x1f8] sm:$0xff]  ;;  %v664_v46 = vld [vmem:[#allocation2 + $0x1f0] sm:$0xff]  ;;  %p1839_p1 = por %p1838_p0, %p1837_p11 }
  0x44   : > { %1490 = vmatpush3.msra.mxu1 %v489_v11  ;;  %1529 = vmatpush3.msra.mxu0 %v470_v16  ;;  %v648_v47 = vld [vmem:[#allocation2 + $0x178] sm:$0xff]  ;;  %v663_v48 = vld [vmem:[#allocation2 + $0x1e8] sm:$0xff]  ;;  %v647_v49 = vld [vmem:[#allocation2 + $0x170] sm:$0xff] }
  0x45   : > { %1491 = vmatprep.subr.mxu1 %v1907_v1  ;;  %1530 = vmatprep.subr.mxu0 %v1907_v1  ;;  %v662_v50 = vld [vmem:[#allocation2 + $0x1e0] sm:$0xff]  ;;  %v646_v51 = vld [vmem:[#allocation2 + $0x168] sm:$0xff]  ;;  %v661_v52 = vld [vmem:[#allocation2 + $0x1d8] sm:$0xff]  ;;  %p1840_p3 = pnand %p1839_p1, %p1833_p8 }
  0x46   : > { %1492 = vmatpush3.msra.mxu1 %v488_v13  ;;  %1531 = vmatpush3.msra.mxu0 %v469_v18  ;;  %v645_v53 = vld [vmem:[#allocation2 + $0x160] sm:$0xff]  ;;  %v660_v54 = vld [vmem:[#allocation2 + $0x1d0] sm:$0xff]  ;;  %v644_v55 = vld [vmem:[#allocation2 + $0x158] sm:$0xff] }
  0x47   : > { %1493 = vmatprep.subr.mxu1 %v1907_v1  ;;  %1532 = vmatprep.subr.mxu0 %v1907_v1  ;;  %v659_v56 = vld [vmem:[#allocation2 + $0x1c8] sm:$0xff]  ;;  %v643_v57 = vld [vmem:[#allocation2 + $0x150] sm:$0xff]  ;;  %v658_v58 = vld [vmem:[#allocation2 + $0x1c0] sm:$0xff] }
  0x48   : > { %1494 = vmatpush3.msra.mxu1 %v487_v15  ;;  %1533 = vmatpush3.msra.mxu0 %v468_v20  ;;  %v642_v59 = vld [vmem:[#allocation2 + $0x148] sm:$0xff]  ;;  %v657_v60 = vld [vmem:[#allocation2 + $0x1b8] sm:$0xff]  ;;  %v641_v61 = vld [vmem:[#allocation2 + $0x140] sm:$0xff] }
  0x49   : > { %1495 = vmatprep.subr.mxu1 %v1907_v1  ;;  %1534 = vmatprep.subr.mxu0 %v1907_v1  ;;  %v656_v62 = vld [vmem:[#allocation2 + $0x1b0] sm:$0xff]  ;;  %v640_v63 = vld [vmem:[#allocation2 + $0x138] sm:$0xff]  ;;  %v655_v0 = vld [vmem:[#allocation2 + $0x1a8] sm:$0xff] }
  0x4a   : > { %1496 = vmatpush3.msra.mxu1 %v486_v17  ;;  %1535 = vmatpush3.msra.mxu0 %v467_v22  ;;  %v639_v3 = vld [vmem:[#allocation2 + $0x130] sm:$0xff]  ;;  %v654_v4 = vld [vmem:[#allocation2 + $0x1a0] sm:$0xff]  ;;  %v638_v5 = vld [vmem:[#allocation2 + $0x128] sm:$0xff] }
  0x4b   : > { %1497 = vmatprep.subr.mxu1 %v1907_v1  ;;  %1536 = vmatprep.subr.mxu0 %v1907_v1  ;;  %v653_v6 = vld [vmem:[#allocation2 + $0x198] sm:$0xff]  ;;  %v637_v7 = vld [vmem:[#allocation2 + $0x120] sm:$0xff]  ;;  %v652_v8 = vld [vmem:[#allocation2 + $0x190] sm:$0xff] }
  0x4c   : > { %1498 = vmatpush3.msra.mxu1 %v485_v19  ;;  %1537 = vmatpush3.msra.mxu0 %v466_v24  ;;  %v636_v9 = vld [vmem:[#allocation2 + $0x118] sm:$0xff]  ;;  %v651_v10 = vld [vmem:[#allocation2 + $0x188] sm:$0xff]  ;;  %v635_v11 = vld [vmem:[#allocation2 + $0x110] sm:$0xff] }
  0x4d   : > { %1499 = vmatprep.subr.mxu1 %v1907_v1  ;;  %1538 = vmatprep.subr.mxu0 %v1907_v1  ;;  %v650_v12 = vld [vmem:[#allocation2 + $0x180] sm:$0xff]  ;;  %v634_v13 = vld [vmem:[#allocation2 + $0x108] sm:$0xff]  ;;  %v839_v15 = vld [vmem:[#allocation2 + $0x2f8] sm:$0xff] }
  0x4e   : > { %1500 = vmatpush3.msra.mxu1 %v484_v21  ;;  %1539 = vmatpush3.msra.mxu0 %v465_v26  ;;  %v633_v14 = vld [vmem:[#allocation2 + $0x100] sm:$0xff]  ;;  %v838_v16 = vld [vmem:[#allocation2 + $0x2f0] sm:$0xff]  ;;  %v822_v17 = vld [vmem:[#allocation2 + $0x278] sm:$0xff] }
  0x4f   : > { %1501 = vmatprep.subr.mxu1 %v1907_v1  ;;  %1540 = vmatprep.subr.mxu0 %v1907_v1  ;;  %v837_v18 = vld [vmem:[#allocation2 + $0x2e8] sm:$0xff]  ;;  %v821_v19 = vld [vmem:[#allocation2 + $0x270] sm:$0xff]  ;;  %v836_v20 = vld [vmem:[#allocation2 + $0x2e0] sm:$0xff] }
  0x50   : > { %1502 = vmatpush3.msra.mxu1 %v483_v23  ;;  %1541 = vmatpush3.msra.mxu0 %v464_v28  ;;  %v820_v21 = vld [vmem:[#allocation2 + $0x268] sm:$0xff]  ;;  %v835_v22 = vld [vmem:[#allocation2 + $0x2d8] sm:$0xff]  ;;  %v819_v23 = vld [vmem:[#allocation2 + $0x260] sm:$0xff] }
  0x51   : > { %1503 = vmatprep.subr.mxu1 %v1907_v1  ;;  %1542 = vmatprep.subr.mxu0 %v1907_v1  ;;  %v834_v24 = vld [vmem:[#allocation2 + $0x2d0] sm:$0xff]  ;;  %v833_v26 = vld [vmem:[#allocation2 + $0x2c8] sm:$0xff]  ;;  %v832_v28 = vld [vmem:[#allocation2 + $0x2c0] sm:$0xff] }
  0x52   : > { %1504 = vmatpush3.msra.mxu1 %v482_v25  ;;  %1543 = vmatpush3.msra.mxu0 %v463_v30  ;;  %v818_v25 = vld [vmem:[#allocation2 + $0x258] sm:$0xff] }
  0x53   : > { %1505 = vmatprep.subr.mxu1 %v1907_v1  ;;  %1544 = vmatprep.subr.mxu0 %v1907_v1  ;;  %v831_v30 = vld [vmem:[#allocation2 + $0x2b8] sm:$0xff] }
  0x54   : > { %1506 = vmatpush3.msra.mxu1 %v481_v27  ;;  %1545 = vmatpush3.msra.mxu0 %v462_v32  ;;  %v817_v27 = vld [vmem:[#allocation2 + $0x250] sm:$0xff] }
  0x55   : > { %1507 = vmatprep.subr.mxu1 %v1907_v1  ;;  %1546 = vmatprep.subr.mxu0 %v1907_v1  ;;  %v830_v32 = vld [vmem:[#allocation2 + $0x2b0] sm:$0xff] }
  0x56   : > { %1508 = vmatpush3.msra.mxu1 %v480_v29  ;;  %1547 = vmatpush3.msra.mxu0 %v461_v34  ;;  %v816_v29 = vld [vmem:[#allocation2 + $0x248] sm:$0xff] }
  0x57   : > { %1509 = vmatprep.subr.mxu1 %v1907_v1  ;;  %1548 = vmatprep.subr.mxu0 %v1907_v1  ;;  %v829_v34 = vld [vmem:[#allocation2 + $0x2a8] sm:$0xff] }
  0x58   : > { %1510 = vmatpush3.msra.mxu1 %v479_v31  ;;  %1549 = vmatpush3.msra.mxu0 %v460_v37  ;;  %v815_v31 = vld [vmem:[#allocation2 + $0x240] sm:$0xff]  ;;  %v812_v37 = vld [vmem:[#allocation2 + $0x228] sm:$0xff] }
  0x59   : > { %1511 = vmatprep.subr.mxu1 %v1907_v1  ;;  %1517 = vmatprep.mubr.msk.f32.mxu1 %vm1908_vm2, %v1907_v1 }
  0x5a   : > { %1512 = vmatpush3.msra.mxu1 %v478_v33  ;;  %1550 = vmatprep.subr.mxu0 %v1907_v1  ;;  %v814_v33 = vld [vmem:[#allocation2 + $0x238] sm:$0xff] }
  0x5b   : > { %1513 = vmatprep.subr.mxu1 %v1907_v1  ;;  %1551 = vmatpush3.msra.mxu0 %v459_v38  ;;  %v827_v38 = vld [vmem:[#allocation2 + $0x298] sm:$0xff] }
  0x5c   : > { %1514 = vmatpush3.msra.mxu1 %v477_v35  ;;  %1590 = vmatprep.subr.mxu0 %v1907_v1  ;;  %v813_v35 = vld [vmem:[#allocation2 + $0x230] sm:$0xff] }
  0x5d   : > { %1515 = vmatprep.subr.mxu1 %v1907_v1 }
  0x5e   : > { %1516 = vmatpush3.msra.mxu1 %v476_v36  ;;  %v828_v36 = vld [vmem:[#allocation2 + $0x2a0] sm:$0xff] }
  0x5f   : > { %1555 = vmatprep.subr.mxu1 %v1907_v1 }
  0xb4   : > { %v366_v39 = vpop.permute.xlu0 %365 }
  0xb8   : > { %v371_v40 = vpop.permute.xlu0 %370 }
  0xff   : > { %v1484_v41 = vpop.f32.mrf.mxu1 }
 0x100   : > { %v2112_v42 = vadd.f32 %v1484_v41, %v371_v40  ;;  %v826_v40 = vld [vmem:[#allocation2 + $0x290] sm:$0xff]  ;;  %v810_v41 = vld [vmem:[#allocation2 + $0x218] sm:$0xff] }
 0x101   : > { %v450_v44 = vpop.f32.mrf.mxu1 }
 0x102   : > { %v2114_v45 = vadd.f32 %v450_v44, %v366_v39  ;;  %1518 = vmatmul.mubr.f32.vlgmr.msra.gmra.mxu1 %v2112_v42  ;;  %v811_v39 = vld [vmem:[#allocation2 + $0x220] sm:$0xff]  ;;  %v809_v44 = vld [vmem:[#allocation2 + $0x210] sm:$0xff] }
 0x103   : > { %1556 = vmatpush3.msra.mxu1 %v665_v43  ;;  %1587 = vmatprep.mubr.msk.f32.mxu1 %vm1908_vm2, %v1907_v1  ;;  %v825_v43 = vld [vmem:[#allocation2 + $0x288] sm:$0xff] }
 0x104   : > { %1557 = vmatprep.subr.mxu1 %v1907_v1  ;;  %1553 = vmatmul.mubr.f32.vlgmr.msra.gmra.mxu0 %v2114_v45 }
 0x105   : > { %1558 = vmatpush3.msra.mxu1 %v664_v46  ;;  %1591 = vmatpush3.msra.mxu0 %v648_v47  ;;  %v824_v46 = vld [vmem:[#allocation2 + $0x280] sm:$0xff]  ;;  %v808_v47 = vld [vmem:[#allocation2 + $0x208] sm:$0xff] }
 0x106   : > { %1559 = vmatprep.subr.mxu1 %v1907_v1  ;;  %1592 = vmatprep.subr.mxu0 %v1907_v1 }
 0x107   : > { %1560 = vmatpush3.msra.mxu1 %v663_v48  ;;  %1593 = vmatpush3.msra.mxu0 %v647_v49  ;;  %v807_v48 = vld [vmem:[#allocation2 + $0x200] sm:$0xff] }
 0x108   : > { %1561 = vmatprep.subr.mxu1 %v1907_v1  ;;  %1594 = vmatprep.subr.mxu0 %v1907_v1  ;;  %v981_v49 = vld [vmem:[%s2262_s6] sm:$0xff] }
 0x109   : > { %1562 = vmatpush3.msra.mxu1 %v662_v50  ;;  %1595 = vmatpush3.msra.mxu0 %v646_v51  ;;  %v1176_v50 = vld [vmem:[#allocation5 + $0xf0] sm:$0xff]  ;;  %v1175_v51 = vld [vmem:[#allocation5 + $0xe8] sm:$0xff] }
 0x10a   : > { %1563 = vmatprep.subr.mxu1 %v1907_v1  ;;  %1596 = vmatprep.subr.mxu0 %v1907_v1 }
 0x10b   : > { %1564 = vmatpush3.msra.mxu1 %v661_v52  ;;  %1597 = vmatpush3.msra.mxu0 %v645_v53  ;;  %v1174_v52 = vld [vmem:[#allocation5 + $0xe0] sm:$0xff]  ;;  %v1173_v53 = vld [vmem:[#allocation5 + $0xd8] sm:$0xff] }
 0x10c   : > { %1565 = vmatprep.subr.mxu1 %v1907_v1  ;;  %1598 = vmatprep.subr.mxu0 %v1907_v1 }
 0x10d   : > { %1566 = vmatpush3.msra.mxu1 %v660_v54  ;;  %1599 = vmatpush3.msra.mxu0 %v644_v55  ;;  %v1172_v54 = vld [vmem:[#allocation5 + $0xd0] sm:$0xff]  ;;  %v1171_v55 = vld [vmem:[#allocation5 + $0xc8] sm:$0xff] }
 0x10e   : > { %1567 = vmatprep.subr.mxu1 %v1907_v1  ;;  %1600 = vmatprep.subr.mxu0 %v1907_v1 }
 0x10f   : > { %1568 = vmatpush3.msra.mxu1 %v659_v56  ;;  %1601 = vmatpush3.msra.mxu0 %v643_v57  ;;  %v1170_v56 = vld [vmem:[#allocation5 + $0xc0] sm:$0xff]  ;;  %v1169_v57 = vld [vmem:[#allocation5 + $0xb8] sm:$0xff] }
 0x110   : > { %1569 = vmatprep.subr.mxu1 %v1907_v1  ;;  %1602 = vmatprep.subr.mxu0 %v1907_v1 }
 0x111   : > { %1570 = vmatpush3.msra.mxu1 %v658_v58  ;;  %1603 = vmatpush3.msra.mxu0 %v642_v59  ;;  %v1168_v58 = vld [vmem:[#allocation5 + $0xb0] sm:$0xff]  ;;  %v1167_v59 = vld [vmem:[#allocation5 + $0xa8] sm:$0xff] }
 0x112   : > { %1571 = vmatprep.subr.mxu1 %v1907_v1  ;;  %1604 = vmatprep.subr.mxu0 %v1907_v1 }
 0x113   : > { %1572 = vmatpush3.msra.mxu1 %v657_v60  ;;  %1605 = vmatpush3.msra.mxu0 %v641_v61  ;;  %v1166_v60 = vld [vmem:[#allocation5 + $0xa0] sm:$0xff]  ;;  %v1165_v61 = vld [vmem:[#allocation5 + $0x98] sm:$0xff] }
 0x114   : > { %1573 = vmatprep.subr.mxu1 %v1907_v1  ;;  %1606 = vmatprep.subr.mxu0 %v1907_v1 }
 0x115   : > { %1574 = vmatpush3.msra.mxu1 %v656_v62  ;;  %1607 = vmatpush3.msra.mxu0 %v640_v63  ;;  %v1164_v62 = vld [vmem:[#allocation5 + $0x90] sm:$0xff]  ;;  %v1163_v63 = vld [vmem:[#allocation5 + $0x88] sm:$0xff] }
 0x116   : > { %1575 = vmatprep.subr.mxu1 %v1907_v1  ;;  %1608 = vmatprep.subr.mxu0 %v1907_v1 }
 0x117   : > { %1576 = vmatpush3.msra.mxu1 %v655_v0  ;;  %1609 = vmatpush3.msra.mxu0 %v639_v3  ;;  %v1162_v0 = vld [vmem:[#allocation5 + $0x80] sm:$0xff]  ;;  %v1161_v3 = vld [vmem:[#allocation5 + $0x78] sm:$0xff] }
 0x118   : > { %1577 = vmatprep.subr.mxu1 %v1907_v1  ;;  %1610 = vmatprep.subr.mxu0 %v1907_v1 }
 0x119   : > { %1578 = vmatpush3.msra.mxu1 %v654_v4  ;;  %1611 = vmatpush3.msra.mxu0 %v638_v5  ;;  %v1160_v4 = vld [vmem:[#allocation5 + $0x70] sm:$0xff]  ;;  %v1159_v5 = vld [vmem:[#allocation5 + $0x68] sm:$0xff] }
 0x11a   : > { %1579 = vmatprep.subr.mxu1 %v1907_v1  ;;  %1612 = vmatprep.subr.mxu0 %v1907_v1 }
 0x11b   : > { %1580 = vmatpush3.msra.mxu1 %v653_v6  ;;  %1613 = vmatpush3.msra.mxu0 %v637_v7  ;;  %v1158_v6 = vld [vmem:[#allocation5 + $0x60] sm:$0xff] }
 0x11c   : > { %1581 = vmatprep.subr.mxu1 %v1907_v1  ;;  %1614 = vmatprep.subr.mxu0 %v1907_v1 }
 0x11d   : > { %1582 = vmatpush3.msra.mxu1 %v652_v8  ;;  %1615 = vmatpush3.msra.mxu0 %v636_v9 }
 0x11e   : > { %1583 = vmatprep.subr.mxu1 %v1907_v1  ;;  %1616 = vmatprep.subr.mxu0 %v1907_v1 }
 0x11f   : > { %1584 = vmatpush3.msra.mxu1 %v651_v10  ;;  %1617 = vmatpush3.msra.mxu0 %v635_v11 }
 0x120   : > { %1585 = vmatprep.subr.mxu1 %v1907_v1  ;;  %1618 = vmatprep.subr.mxu0 %v1907_v1 }
 0x121   : > { %1586 = vmatpush3.msra.mxu1 %v650_v12  ;;  %1619 = vmatpush3.msra.mxu0 %v634_v13 }
 0x122   : > { %1588 = vmatmul.mubr.f32.vlgmr.msra.gmra.mxu1 %v2112_v42  ;;  %1620 = vmatprep.subr.mxu0 %v1907_v1 }
 0x123   : > { %1625 = vmatprep.subr.mxu1 %v1907_v1  ;;  %1621 = vmatpush3.msra.mxu0 %v633_v14 }
 0x124   : > { %1622 = vmatprep.mubr.msk.f32.mxu0 %vm1908_vm2, %v1907_v1  ;;  %1626 = vmatpush3.msra.mxu1 %v839_v15 }
 0x125   : > { %1623 = vmatmul.mubr.f32.vlgmr.msra.gmra.mxu0 %v2114_v45  ;;  %1627 = vmatprep.subr.mxu1 %v1907_v1 }
 0x126   : > { %1660 = vmatprep.subr.mxu0 %v1907_v1  ;;  %1628 = vmatpush3.msra.mxu1 %v838_v16 }
 0x127   : > { %1661 = vmatpush3.msra.mxu0 %v822_v17  ;;  %1629 = vmatprep.subr.mxu1 %v1907_v1 }
 0x128   : > { %1662 = vmatprep.subr.mxu0 %v1907_v1  ;;  %1630 = vmatpush3.msra.mxu1 %v837_v18 }
 0x129   : > { %1663 = vmatpush3.msra.mxu0 %v821_v19  ;;  %1631 = vmatprep.subr.mxu1 %v1907_v1 }
 0x12a   : > { %1664 = vmatprep.subr.mxu0 %v1907_v1  ;;  %1632 = vmatpush3.msra.mxu1 %v836_v20 }
 0x12b   : > { %1665 = vmatpush3.msra.mxu0 %v820_v21  ;;  %1633 = vmatprep.subr.mxu1 %v1907_v1 }
 0x12c   : > { %1666 = vmatprep.subr.mxu0 %v1907_v1  ;;  %1634 = vmatpush3.msra.mxu1 %v835_v22  ;;  %v980_v22 = vld [vmem:[%s2261_s5] sm:$0xff] }
 0x12d   : > { %1667 = vmatpush3.msra.mxu0 %v819_v23  ;;  %1635 = vmatprep.subr.mxu1 %v1907_v1  ;;  %v1061_v23 = vld [vmem:[%s2263_s7] sm:$0xff] }
 0x12e   : > { %1668 = vmatprep.subr.mxu0 %v1907_v1  ;;  %1636 = vmatpush3.msra.mxu1 %v834_v24  ;;  %v1157_v24 = vld [vmem:[#allocation5 + $0x58] sm:$0xff] }
 0x12f   : > { %1669 = vmatpush3.msra.mxu0 %v818_v25  ;;  %1637 = vmatprep.subr.mxu1 %v1907_v1  ;;  %v1156_v25 = vld [vmem:[#allocation5 + $0x50] sm:$0xff] }
 0x130   : > { %1670 = vmatprep.subr.mxu0 %v1907_v1  ;;  %1638 = vmatpush3.msra.mxu1 %v833_v26  ;;  %v1155_v26 = vld [vmem:[#allocation5 + $0x48] sm:$0xff] }
 0x131   : > { %1671 = vmatpush3.msra.mxu0 %v817_v27  ;;  %1639 = vmatprep.subr.mxu1 %v1907_v1  ;;  %v1154_v27 = vld [vmem:[#allocation5 + $0x40] sm:$0xff] }
 0x132   : > { %1672 = vmatprep.subr.mxu0 %v1907_v1  ;;  %1640 = vmatpush3.msra.mxu1 %v832_v28  ;;  %v1153_v28 = vld [vmem:[#allocation5 + $0x38] sm:$0xff] }
 0x133   : > { %1673 = vmatpush3.msra.mxu0 %v816_v29  ;;  %1641 = vmatprep.subr.mxu1 %v1907_v1  ;;  %v1151_v29 = vld [vmem:[#allocation5 + $0x28] sm:$0xff] }
 0x134   : > { %1674 = vmatprep.subr.mxu0 %v1907_v1  ;;  %1642 = vmatpush3.msra.mxu1 %v831_v30  ;;  %v1149_v30 = vld [vmem:[#allocation5 + $0x18] sm:$0xff] }
 0x135   : > { %1675 = vmatpush3.msra.mxu0 %v815_v31  ;;  %1643 = vmatprep.subr.mxu1 %v1907_v1  ;;  %v1148_v31 = vld [vmem:[#allocation5 + $0x10] sm:$0xff] }
 0x136   : > { %1676 = vmatprep.subr.mxu0 %v1907_v1  ;;  %1644 = vmatpush3.msra.mxu1 %v830_v32  ;;  %v1147_v32 = vld [vmem:[#allocation5 + $0x8] sm:$0xff] }
 0x137   : > { %1677 = vmatpush3.msra.mxu0 %v814_v33  ;;  %1645 = vmatprep.subr.mxu1 %v1907_v1  ;;  %v1146_v33 = vld [vmem:[#allocation5] sm:$0xff] }
 0x138   : > { %1678 = vmatprep.subr.mxu0 %v1907_v1  ;;  %1646 = vmatpush3.msra.mxu1 %v829_v34 }
 0x139   : > { %1679 = vmatpush3.msra.mxu0 %v813_v35  ;;  %1647 = vmatprep.subr.mxu1 %v1907_v1 }
 0x13a   : > { %1680 = vmatprep.subr.mxu0 %v1907_v1  ;;  %1648 = vmatpush3.msra.mxu1 %v828_v36 }
 0x13b   : > { %1681 = vmatpush3.msra.mxu0 %v812_v37  ;;  %1649 = vmatprep.subr.mxu1 %v1907_v1 }
 0x13c   : > { %1682 = vmatprep.subr.mxu0 %v1907_v1  ;;  %1650 = vmatpush3.msra.mxu1 %v827_v38 }
 0x13d   : > { %1683 = vmatpush3.msra.mxu0 %v811_v39  ;;  %1651 = vmatprep.subr.mxu1 %v1907_v1 }
 0x13e   : > { %1684 = vmatprep.subr.mxu0 %v1907_v1  ;;  %1652 = vmatpush3.msra.mxu1 %v826_v40 }
 0x13f   : > { %1685 = vmatpush3.msra.mxu0 %v810_v41  ;;  %1653 = vmatprep.subr.mxu1 %v1907_v1 }
 0x140   : > { %1686 = vmatprep.subr.mxu0 %v1907_v1  ;;  %1654 = vmatpush3.msra.mxu1 %v825_v43 }
 0x141   : > { %1687 = vmatpush3.msra.mxu0 %v809_v44  ;;  %1655 = vmatprep.subr.mxu1 %v1907_v1 }
 0x142   : > { %1688 = vmatprep.subr.mxu0 %v1907_v1  ;;  %1656 = vmatpush3.msra.mxu1 %v824_v46 }
 0x143   : > { %1657 = vmatprep.mubr.msk.f32.mxu1 %vm1908_vm2, %v1907_v1  ;;  %1689 = vmatpush3.msra.mxu0 %v808_v47 }
 0x144   : > { %1658 = vmatmul.mubr.f32.vlgmr.msra.gmra.mxu1 %v2112_v42  ;;  %1690 = vmatprep.subr.mxu0 %v1907_v1  ;;  %v1177_v42 = vld [vmem:[#allocation5 + $0xf8] sm:$0xff] }
 0x145   : > { %1691 = vmatpush3.msra.mxu0 %v807_v48  ;;  %1692 = vmatprep.mubr.msk.f32.mxu0 %vm1908_vm2, %v1907_v1 }
 0x146   : > { %1693 = vmatmul.mubr.f32.vlgmr.msra.gmra.mxu0 %v2114_v45  ;;  %1695 = vmatprep.subr.mxu1 %v1907_v1  ;;  %v1136_v45 = vld [vmem:[%s2264_s8] sm:$0xff] }
 0x147   : > { %1701 = vmatprep.mubr.msk.f32.mxu1 %vm1908_vm2, %v1907_v1  ;;  %1242 = vmatprep.mubr.f32.mxu0 %v1907_v1 }
 0x148   : > { %984 = vperm.xlu1 %1777, %v981_v49   ;;  %1178 = vmatprep.subr.mxu0 %v1177_v42 }
 0x149   : > { %1179 = vmatpush1.msra.mxu0 %v1176_v50 }
 0x14a   : > { %1180 = vmatprep.subr.mxu0 %v1175_v51 }
 0x14b   : > { %1181 = vmatpush1.msra.mxu0 %v1174_v52 }
 0x14c   : > { %1139 = vperm.xlu1 %1777, %v1136_v45   ;;  %1182 = vmatprep.subr.mxu0 %v1173_v53 }
 0x14d   : > { %1183 = vmatpush1.msra.mxu0 %v1172_v54 }
 0x14e   : > { %1184 = vmatprep.subr.mxu0 %v1171_v55 }
 0x14f   : > { %1185 = vmatpush1.msra.mxu0 %v1170_v56 }
 0x150   : > { %1186 = vmatprep.subr.mxu0 %v1169_v57 }
 0x151   : > { %1187 = vmatpush1.msra.mxu0 %v1168_v58 }
 0x152   : > { %1188 = vmatprep.subr.mxu0 %v1167_v59 }
 0x153   : > { %1189 = vmatpush1.msra.mxu0 %v1166_v60 }
 0x154   : > { %1190 = vmatprep.subr.mxu0 %v1165_v61 }
 0x155   : > { %1191 = vmatpush1.msra.mxu0 %v1164_v62 }
 0x156   : > { %1192 = vmatprep.subr.mxu0 %v1163_v63 }
 0x157   : > { %1193 = vmatpush1.msra.mxu0 %v1162_v0 }
 0x158   : > { %1194 = vmatprep.subr.mxu0 %v1161_v3 }
 0x159   : > { %1195 = vmatpush1.msra.mxu0 %v1160_v4 }
 0x15a   : > { %1196 = vmatprep.subr.mxu0 %v1159_v5 }
 0x15b   : > { %1197 = vmatpush1.msra.mxu0 %v1158_v6 }
 0x15c   : > { %1198 = vmatprep.subr.mxu0 %v1157_v24 }
 0x15d   : > { %1199 = vmatpush1.msra.mxu0 %v1156_v25 }
 0x15e   : > { %1200 = vmatprep.subr.mxu0 %v1155_v26 }
 0x15f   : > { %1201 = vmatpush1.msra.mxu0 %v1154_v27 }
 0x160   : > { %1202 = vmatprep.subr.mxu0 %v1153_v28 }
 0x1c2   : > { %v558_v7 = vpop.f32.mrf.mxu1 }
 0x1c3   : > { %v985_v34 = vpop.permute.xlu1 %984 }
 0x1c4   : > { %v1519_v8 = vpop.f32.mrf.mxu1  ;;  %v628_v9 = vpop.f32.mrf.mxu0 }
 0x1c5   : > { %v629_v10 = vadd.f32 %v628_v9, %v558_v7 }
 0x1c6   : > { %v1554_v11 = vpop.f32.mrf.mxu0 }
 0x1c7   : > { %v1140_v40 = vpop.permute.xlu1 %1139 }
 0x1e2   : > { %v732_v12 = vpop.f32.mrf.mxu1 }
 0x1e4   : > { %v1589_v13 = vpop.f32.mrf.mxu1 }
 0x1e5   : > { %v802_v14 = vpop.f32.mrf.mxu0 }
 0x1e6   : > { %v803_v21 = vadd.f32 %v802_v14, %v732_v12 }
 0x1e7   : > { %v1624_v15 = vpop.f32.mrf.mxu0 }
 0x204   : > { %v906_v16 = vpop.f32.mrf.mxu1 }
 0x206   : > { %v1659_v17 = vpop.f32.mrf.mxu1  ;;  %v976_v18 = vpop.f32.mrf.mxu0 }
 0x207   : > { %v977_v19 = vadd.f32 %v976_v18, %v906_v16 }
 0x208   : > { %v1694_v20 = vpop.f32.mrf.mxu0 }
 0x209   : > { %1696 = vmatpush3.msra.mxu1 %v977_v19 }
 0x20a   : > { %1697 = vmatprep.subr.mxu1 %v1907_v1 }
 0x20b   : > { %1698 = vmatpush3.msra.mxu1 %v803_v21 }
 0x20c   : > { %1699 = vmatprep.subr.mxu1 %v1907_v1 }
 0x20d   : > { %1700 = vmatpush3.msra.mxu1 %v629_v10 }
 0x20e   : > { %1702 = vmatmul.mubr.msk.f32.vlgmr.msra.gmra.mxu1 %vm987_vm3, %v980_v22  ;;  %1704 = vmatprep.subr.mxu1 %v1907_v1 }
 0x20f   : > { %1705 = vmatpush3.msk.msra.mxu1 %vm380_vm0, %v2055_v2  ;;  %1706 = vmatprep.mubr.msk.f32.mxu1 %vm1908_vm2, %v1907_v1  ;;  %v1152_v2 = vld [vmem:[#allocation5 + $0x30] sm:$0xff]  ;;  %v1150_v1 = vld [vmem:[#allocation5 + $0x20] sm:$0xff] }
 0x210   : > { %1203 = vmatpush1.msra.mxu0 %v1152_v2 }
 0x211   : > { %1204 = vmatprep.subr.mxu0 %v1151_v29 }
 0x212   : > { %1707 = vmatmul.mubr.msk.f32.vlgmr.msra.gmra.mxu1 %vm373_vm1, %v1061_v23  ;;  %1205 = vmatpush1.msra.mxu0 %v1150_v1 }
 0x213   : > { %1206 = vmatprep.subr.mxu0 %v1149_v30 }
 0x214   : > { %1207 = vmatpush1.msra.mxu0 %v1148_v31 }
 0x215   : > { %1208 = vmatprep.subr.mxu0 %v1147_v32 }
 0x216   : > { %1209 = vmatpush1.msra.mxu0 %v1146_v33 }
 0x2ce   : > { %v1057_v35 = vpop.f32.mrf.mxu1 }
 0x2cf   : > { %v1058_v37 = vadd.f32 %v1057_v35, %v985_v34 }
 0x2d0   : > { %v1703_v36 = vpop.f32.mrf.mxu1 }
 0x2d2   : > { %v1131_v38 = vpop.f32.mrf.mxu1 }
 0x2d3   : > { %v1135_v39 = vadd.f32 %v1131_v38, %v1058_v37 }
 0x2d4   : > { %v1708_v41 = vpop.f32.mrf.mxu1 }
 0x2d5   : > { %v1142_v43 = vadd.f32 %v1140_v40, %v1135_v39 }
 0x2d7   : > { %v1144_v44 = vmul.f32 0.2, %v1142_v43  ;;  %vm1143_vm4 = vcmp.ge.f32.partialorder %v1142_v43, 0.0 }
 0x2d9   : > { %v1145_v46 = vsel %vm1143_vm4, %v1142_v43, %v1144_v44 }
 0x2da   : > { %1243 = vmatmul.mubr.f32.vlgmr.msra.gmra.mxu0 %v1145_v46 }
 0x39a   : > { %v1244_v47 = vpop.f32.mrf.mxu0 }
 0x39b   : > { %1249 = vst [vmem:[%s353_s22] sm:$0xff] %v1244_v47 }
 0x39c   : > { %v1246_v48 = vpop.f32.mrf.mxu0 }
 0x39d   : > { %1250 = vst [vmem:[%s353_s22 + $0x8] sm:$0xff] %v1246_v48 }
 0x39e   : > { %1843 = shalt.err (!%p1840_p3)
}
 0x39f   : > { %s1844_s14 = scalar_lea.hbm %s1264_s23, 256  ;;  %s1848_s22 = scalar_lea.hbm %s2265_s9, 512 }
 0x3a0   : > { %p1845_p2 = scmp.ne.s32.totalorder %s1264_s23, %s1844_s14  ;;  %p1849_p6 = scmp.lt.s32.totalorder %s1264_s23, %s2265_s9 }
 0x3a1   : > { %p1850_p9 = scmp.lt.s32.totalorder %s1848_s22, %s1844_s14 }
 0x3a2   : > { %p1846_p4 = pnand %p1845_p2, %p1998_p5 }
 0x3a3   : > { %p1851_p7 = por %p1850_p9, %p1849_p6 }
 0x3a4   : > { %p1847_p13 = pneg %p1846_p4 }
 0x3a6   : > { %p1852_p10 = pnand %p1851_p7, %p1847_p13 }
 0x3a8   : > { %1855 = shalt.err (!%p1852_p10)
}
 0x3a9   : > { %1717 = dma.vmem_to_hbm [thread:$0]  (%p1998_p5), %s2218_s25, 256, %s1264_s23, %s1252_s24  }
 0x3aa PF: > { %p1734_p12 = scmp.ge.s32.totalorder %s1898_s12, 2  ;;  %s1278_s21 = sand.u32 1, %s1886_s30  }
 0x3ab   : > { %p2276_p8 = scmp.ne.s32.totalorder %s2269_s20, 0  ;;  %s1279_s26 = scalar_lea.sflag [#allocation4], %s1278_s21 }
 0x3ad   : > { %p1727_p11 = pnand %p1734_p12, %p2276_p8 }
 0x3af   : > { %p1728_p0 = pneg %p1727_p11 }
 0x3b1   : > { %1881 = dma.done.wait (%p1728_p0), %s1279_s26, 256  }
 0x3b2   : > { %1883 = vsyncadd (%p1728_p0), %s1279_s26, 4294967040  ;;  %s2277_s13 = sld [smem:[#allocation11_spill]]  ;;  %p21_p1 = scmp.ge.s32.totalorder %s1985_s15, 4  }
 0x3b3   : > { %s2278_s30 = smov %s1890_s10  ;;  %s2279_s10 = smov %s1894_s11 }
 0x3b4   : > { %s2281_s12 = smov %s1985_s15  ;;  %23 = sbr.rel (!%p21_p1) target bundleno = 5 (0x5), region = 105 }
 0x3b8   : > { %s2280_s11 = smov %s2277_s13 }
 0x3b9   :  { %1284 = vsyncpa [#allocation3], 1 }
 0x3ba   :  { %1286 = vsyncpa [#allocation3 + $0x1], 1 }
 0x3bb   :  { %1287 = vsyncpa [#allocation6], 1 }
 0x3bc   :  { %1288 = vsyncpa [#allocation4], 1 }
 0x3bd   :  { %1290 = vsyncpa [#allocation4 + $0x1], 1 }

</bundles_post_ra>
